<compile_context>
chip_gen: v6e
topology: v6e:2x2x1
jax: 0.10.0
libtpu: 0.0.40
codegen_flags: <defaults>
</compile_context>

<pallas_src>
import math
import jax
import jax.numpy as jnp
from jax.experimental import pallas as pl
from jax.experimental.pallas import tpu as pltpu


def _round_up(x: int, m: int) -> int:
    return (x + m - 1) // m * m


def _sublane_multiple(dtype) -> int:
    # Sub-32-bit dtypes pack along sublanes: f32 -> 8, bf16 -> 16, int8/fp8 -> 32.
    return max(8, 32 // jnp.dtype(dtype).itemsize)


def mat_embedding_kernel(x_ref, w_ref, b_ref, o_ref):
    # Single linear layer: y = x @ W + b (f32 accumulation on the MXU).
    # Dropout with p=0.0 (inference) is the identity, so nothing else to do.
    y = jnp.dot(x_ref[...], w_ref[...], preferred_element_type=jnp.float32)
    o_ref[...] = (y + b_ref[...]).astype(o_ref.dtype)


def mat_embedding(x, w, b, *, tm: int = 512):
    """MATEmbedding forward.

    x: (..., d_input)        arbitrary leading dims (like nn.Linear)
    w: (d_input, d_output)   already transposed relative to torch's weight
    b: (d_output,)
    returns: (..., d_output)
    """
    *lead, d_in = x.shape
    d_out = w.shape[1]
    M = math.prod(lead) if lead else 1

    # Flatten leading dims; no feature/row padding (full-extent K blocks below).
    x2 = x.reshape(M, d_in)
    b2 = b.reshape(1, d_out)

    # Dtype-aware row tile; clamp for small problems.
    sub = _sublane_multiple(x.dtype)
    tm_eff = min(tm, _round_up(M, sub))
    # Guarantee >=2 grid steps when possible so v7x megacore can use both cores.
    if pl.cdiv(M, tm_eff) == 1 and tm_eff >= 2 * sub:
        tm_eff = _round_up(pl.cdiv(M, 2), sub)
    grid = (pl.cdiv(M, tm_eff),)

    itemsize = jnp.dtype(x.dtype).itemsize
    cost = pl.CostEstimate(
        flops=2 * M * d_in * d_out,
        transcendentals=0,
        bytes_accessed=(M * d_in + d_in * d_out + d_out + M * d_out) * itemsize,
    )

    out = pl.pallas_call(
        mat_embedding_kernel,
        out_shape=jax.ShapeDtypeStruct((M, d_out), x.dtype),
        grid_spec=pltpu.PrefetchScalarGridSpec(
            num_scalar_prefetch=0,
            grid=grid,
            in_specs=[
                # x: row-tiled, full-extent K (block dim == array dim, no pad).
                pl.BlockSpec((tm_eff, d_in), lambda i: (i, 0)),
                # W, b: full-extent, VMEM-resident via constant index_map.
                pl.BlockSpec((d_in, d_out), lambda i: (0, 0)),
                pl.BlockSpec((1, d_out), lambda i: (0, 0)),
            ],
            out_specs=pl.BlockSpec((tm_eff, d_out), lambda i: (i, 0)),
        ),
        compiler_params=pltpu.CompilerParams(
            dimension_semantics=("parallel",)),
        cost_estimate=cost,
    )(x2, w, b2)

    return out.reshape(*lead, d_out) if lead else out.reshape(d_out)


def init_linear(key, d_in, d_out, dtype=jnp.float32):
    """Deterministic PyTorch-style nn.Linear init; weight returned as (d_in, d_out)."""
    kw, kb = jax.random.split(key)
    bound = 1.0 / math.sqrt(d_in)
    w = jax.random.uniform(kw, (d_in, d_out), dtype, minval=-bound, maxval=bound)
    b = jax.random.uniform(kb, (d_out,), dtype, minval=-bound, maxval=bound)
    return w, b


if __name__ == "__main__":
    # MATEmbedding defaults: d_input=36, d_output=1024, dropout_p=0.0.
    # Input laid out as (batch, seq, d_input) as used inside MAT.
    # TODO(synk): training-mode dropout (p > 0 Bernoulli mask + scale) not
    # implemented; dropout_p = 0.0 / eval-mode identity semantics only.
    B, S = 2, 8
    d_input, d_output = 36, 1024

    key = jax.random.PRNGKey(0)
    kx, klin = jax.random.split(key)
    x = jax.random.normal(kx, (B, S, d_input), jnp.float32)
    w, b = init_linear(klin, d_input, d_output)

    y = mat_embedding(x, w, b)
    jax.block_until_ready(y)

    # Pure-JAX reference (same math as the PyTorch forward pass).
    y_ref = (x.reshape(-1, d_input) @ w + b).reshape(B, S, d_output)
    assert y.shape == (B, S, d_output)
    assert jnp.allclose(y, y_ref, atol=1e-5, rtol=1e-5), "mismatch vs reference"

    # Ragged-row path (M not a multiple of the sublane tile): partial blocks
    # are masked by Pallas, no wrapper-side pad or slice copy.
    x3 = jax.random.normal(jax.random.PRNGKey(1), (3, d_input), jnp.float32)
    y3 = mat_embedding(x3, w, b)
    jax.block_until_ready(y3)
    y3_ref = x3 @ w + b
    assert y3.shape == (3, d_output)
    assert jnp.allclose(y3, y3_ref, atol=1e-5, rtol=1e-5), "ragged mismatch"

    print("KERNEL_OK")
</pallas_src>

<mosaic_0001>
module attributes {stable_mosaic.version = 11 : i64} {
  func.func @mat_embedding_kernel(%arg0: i32, %arg1: memref<8x36xf32, #tpu.memory_space<vmem>>, %arg2: memref<36x1024xf32, #tpu.memory_space<vmem>>, %arg3: memref<1x1024xf32, #tpu.memory_space<vmem>>, %arg4: memref<8x1024xf32, #tpu.memory_space<vmem>>) attributes {dimension_semantics = [#tpu.dimension_semantics<parallel>], iteration_bounds = array<i64: 2>, scalar_prefetch = 0 : i64, scratch_operands = 0 : i64, tpu.core_type = #tpu.core_type<tc>, window_params = [{transform_indices = @transform_0, window_bounds = array<i64: 8, 36>}, {pipeline_mode = #tpu.pipeline_mode<synchronous>, transform_indices = @transform_1, window_bounds = array<i64: 36, 1024>}, {pipeline_mode = #tpu.pipeline_mode<synchronous>, transform_indices = @transform_2, window_bounds = array<i64: 1, 1024>}, {transform_indices = @transform_3, window_bounds = array<i64: 8, 1024>}]} {
    %c0 = arith.constant 0 : index
    %c0_0 = arith.constant 0 : index
    %0 = vector.load %arg1[%c0, %c0_0] : memref<8x36xf32, #tpu.memory_space<vmem>>, vector<8x36xf32>
    %c0_1 = arith.constant 0 : index
    %c0_2 = arith.constant 0 : index
    %1 = vector.load %arg2[%c0_1, %c0_2] : memref<36x1024xf32, #tpu.memory_space<vmem>>, vector<36x1024xf32>
    %cst = arith.constant dense<0.000000e+00> : vector<8x1024xf32>
    %2 = tpu.matmul %0, %1, %cst {dimension_numbers = #tpu.dot_dimension_numbers<[1], [0], [0], [1], [0, 0, 1, 1], [], []>} : vector<8x36xf32>, vector<36x1024xf32>, vector<8x1024xf32> -> vector<8x1024xf32>
    %c0_3 = arith.constant 0 : index
    %c0_4 = arith.constant 0 : index
    %3 = vector.load %arg3[%c0_3, %c0_4] : memref<1x1024xf32, #tpu.memory_space<vmem>>, vector<1x1024xf32>
    %4 = vector.broadcast %3 : vector<1x1024xf32> to vector<8x1024xf32>
    %5 = arith.addf %2, %4 : vector<8x1024xf32>
    %c0_5 = arith.constant 0 : index
    %c0_6 = arith.constant 0 : index
    %6 = vector.load %arg4[%c0_5, %c0_6] : memref<8x1024xf32, #tpu.memory_space<vmem>>, vector<8x1024xf32>
    tpu.vector_store %arg4[%c0_5, %c0_6], %5 {strides = array<i32>} : memref<8x1024xf32, #tpu.memory_space<vmem>>, vector<8x1024xf32>,
    return
  }
  func.func @transform_0(%arg0: i32) -> (i32, i32) {
    %c0_i32 = arith.constant 0 : i32
    %c0_i32_0 = arith.constant 0 : i32
    return %arg0, %c0_i32 : i32, i32
  }
  func.func @transform_1(%arg0: i32) -> (i32, i32) {
    %c0_i32 = arith.constant 0 : i32
    %c0_i32_0 = arith.constant 0 : i32
    %c0_i32_1 = arith.constant 0 : i32
    return %c0_i32, %c0_i32_0 : i32, i32
  }
  func.func @transform_2(%arg0: i32) -> (i32, i32) {
    %c0_i32 = arith.constant 0 : i32
    %c0_i32_0 = arith.constant 0 : i32
    %c0_i32_1 = arith.constant 0 : i32
    return %c0_i32, %c0_i32_0 : i32, i32
  }
  func.func @transform_3(%arg0: i32) -> (i32, i32) {
    %c0_i32 = arith.constant 0 : i32
    %c0_i32_0 = arith.constant 0 : i32
    return %arg0, %c0_i32 : i32, i32
  }
}

</mosaic_0001>

<bundles_post_ra>
// kernel: tpu_custom_call.1
= control target key start
LH: loop header
LB: loop body
LE: loop exit
PB: predicated region body
PF: predicated region fallthrough
CT: control target
= control target key end

     0   :  { %8 = vsyncpa [#allocation3], 0  ;;  %s1189_s0 = inlined_call_operand.hbm [shape: f32[16,36], index: 0, kind: input, shape index: {}]   ;;  %s1190_s1 = inlined_call_operand.hbm [shape: f32[36,1024], index: 1, kind: input, shape index: {}]   ;;  %s1191_s2 = inlined_call_operand.hbm [shape: f32[1,1024], index: 2, kind: input, shape index: {}]   ;;  %s1192_s3 = inlined_call_operand.hbm [shape: f32[16,1024], index: 3, kind: output, shape index: {}]  }
   0x1   :  { %10 = vsyncpa [#allocation3 + $0x1], 0 }
   0x2   :  { %11 = vsyncpa [#allocation6], 0 }
   0x3   :  { %12 = vsyncpa [#allocation4], 0 }
   0x4   :  { %14 = vsyncpa [#allocation4 + $0x1], 0  ;;  %s998_s12 = smov 0   ;;  %s1000_s13 = smov 0  }
   0x5   :  { %s1002_s14 = smov 0   ;;  %s1004_s15 = smov 0  }
   0x6 LB: > { %s1019_s16 = sadd.s32 4294967295, %s969_s15   ;;  %s721_s17 = sadd.s32 4294967294, %s969_s15   ;;  %s969_s15 = sphi %s1004_s15, %s1214_s15   ;;  %s965_s14 = sphi %s1002_s14, %s1213_s14   ;;  %s961_s13 = sphi %s1000_s13, %s1212_s13   ;;  %s957_s12 = sphi %s998_s12, %s1211_s12  }
   0x7   : > { %p40_p0 = scmp.ne.s32.totalorder %s961_s13, %s957_s12  ;;  %p1193_p1 = scmp.eq.s32.totalorder %s1019_s16, 0 }
   0x8   : > { %p112_p3 = scmp.eq.s32.totalorder %s721_s17, 1  ;;  %p722_p5 = scmp.ge.s32.totalorder %s969_s15, 1 }
   0x9   : > { %p1028_p4 = por %p1193_p1, %p40_p0  ;;  %p119_p7 = scmp.lt.s32.totalorder %s969_s15, 3 }
   0xa   : > { %p1033_p6 = por %p112_p3, %p40_p0  ;;  %s971_s21 = smov [#allocation5]  }
   0xb   : > { %s1197_s18 = scalar_select %p1028_p4, 1, 0 }
   0xc   : > { %s1198_s19 = scalar_select %p1033_p6, 1, 0 }
   0xd   : > { %p1038_p8 = pnand %p722_p5, %p119_p7  ;;  %s131_s22 = sshll.u32 %s971_s21, 4  ;;  %s132_s22 = int_to_ptr.vmem [resolvable:$true] %s131_s22 }
   0xe   : > { %s972_s24 = smov [#allocation7]   ;;  %s832_s26 = scalar_lea.vmem %s132_s22, 5120 }
   0xf   : > { %s1199_s20 = scalar_select %p1038_p8, 1, 0 }
  0x10   : > { %p763_p9 = pneg %p1038_p8  ;;  %s145_s25 = sshll.u32 %s972_s24, 4  ;;  %s146_s25 = int_to_ptr.vmem [resolvable:$true] %s145_s25 }
  0x11   : > { %p833_p13 = scmp.ne.s32.totalorder %s132_s22, %s832_s26  ;;  %p840_p5 = scmp.lt.s32.totalorder %s132_s22, %s132_s22 }
  0x12   : > { %p1047_p11 = pnand %p763_p9, %p1193_p1  ;;  %p841_p7 = scmp.lt.s32.totalorder %s832_s26, %s832_s26 }
  0x14   : > { %p823_p12 = pneg %p1047_p11  ;;  %p842_p10 = por %p841_p7, %p840_p5 }
  0x16   : > { %p835_p0 = pnand %p833_p13, %p823_p12 }
  0x18   : > { %p836_p3 = pneg %p835_p0 }
  0x1a   : > { %p843_p9 = pnand %p842_p10, %p836_p3 }
  0x1c   : > { %846 = shalt.err (!%p843_p9)
}
  0x1d   : > { %s973_s27 = smov 1024   ;;  %s974_s28 = smov 64  }
  0x1e   : > { %766 = dma.hbm_to_vmem [thread:$0]  (!%p1047_p11), %s1190_s1, 5120, %s132_s22, [#allocation6], %s973_s27, %s973_s27, %s974_s28  }
  0x1f   : > { %s858_s4 = scalar_lea.vmem %s146_s25, 128  ;;  %p866_p2 = scmp.lt.s32.totalorder %s146_s25, %s146_s25 }
  0x20   : > { %p859_p1 = scmp.ne.s32.totalorder %s146_s25, %s858_s4  ;;  %p867_p6 = scmp.lt.s32.totalorder %s858_s4, %s858_s4 }
  0x22   : > { %p861_p13 = pnand %p859_p1, %p823_p12  ;;  %p868_p5 = por %p867_p6, %p866_p2 }
  0x24   : > { %p862_p0 = pneg %p861_p13 }
  0x26   : > { %p869_p10 = pnand %p868_p5, %p862_p0 }
  0x28   : > { %872 = shalt.err (!%p869_p10)
}
  0x29   : > { %769 = dma.hbm_to_vmem [thread:$0]  (!%p1047_p11), %s1191_s2, 128, %s146_s25, [#allocation6]  }
  0x2a   : > { %s1070_s7 = sadd.s32 1, %s969_s15   ;;  %s27_s8 = sadd.s32 1, %s965_s14 }
  0x2b   : > { %s24_s9 = ssub.s32 %s969_s15, %s1070_s7  ;;  %p34_p1 = scmp.ne.s32.totalorder %s965_s14, %s961_s13 }
  0x2c   : > { %p25_p2 = scmp.eq.s32.totalorder %s24_s9, 0  ;;  %p35_p6 = scmp.eq.s32.totalorder %s969_s15, 0 }
  0x2d   : > { %p1201_p12 = scmp.eq.s32.totalorder %s1019_s16, 1  ;;  %p780_p7 = scmp.lt.s32.totalorder %s969_s15, 2 }
  0x2e   : > { %s1086_s11 = scalar_select %p25_p2, %s965_s14, %s27_s8  }
  0x2f   : > { %p1080_p3 = por %p1201_p12, %p34_p1  ;;  %p36_p9 = por %p35_p6, %p34_p1 }
  0x30   : > { %s156_s17 = sand.u32 1, %s965_s14   ;;  %s727_s22 = sshll.u32 %s969_s15, 7 }
  0x31   : > { %s1202_s10 = scalar_select %p1080_p3, 1, 0 }
  0x32   : > { %s726_s21 = sshll.u32 %s156_s17, 3  ;;  %s1093_s25 = scalar_lea.hbm %s1189_s0, %s727_s22 }
  0x33   : > { %s160_s26 = scalar_lea.vmem [#allocation2], %s726_s21  ;;  %p1095_p11 = pnand %p780_p7, %p36_p9 }
  0x34   : > { %s167_s27 = sshll.u32 %s160_s26, 4  ;;  %s157_s29 = scalar_lea.sflag [#allocation3], %s156_s17  ;;  %s168_s27 = int_to_ptr.vmem [resolvable:$true] %s167_s27 }
  0x35   : > { %s873_s30 = scalar_lea.hbm %s1093_s25, 128  ;;  %p875_p0 = pneg %p1095_p11 }
  0x36   : > { %p874_p13 = scmp.ne.s32.totalorder %s1093_s25, %s873_s30  ;;  %s878_s6 = scalar_lea.hbm %s1189_s0, 256 }
  0x37   : > { %p879_p1 = scmp.lt.s32.totalorder %s1093_s25, %s1189_s0  ;;  %p880_p2 = scmp.lt.s32.totalorder %s878_s6, %s873_s30 }
  0x38   : > { %p876_p5 = pnand %p875_p0, %p874_p13 }
  0x39   : > { %p881_p6 = por %p880_p2, %p879_p1 }
  0x3a   : > { %p877_p10 = pneg %p876_p5 }
  0x3c   : > { %p882_p12 = pnand %p881_p6, %p877_p10 }
  0x3e   : > { %885 = shalt.err (!%p882_p12)
}
  0x3f   : > { %s886_s21 = scalar_lea.vmem %s168_s27, 128  ;;  %s975_s17 = smov [#allocation2]  }
  0x40   : > { %p887_p7 = scmp.ne.s32.totalorder %s168_s27, %s886_s21  ;;  %s891_s22 = sshll.u32 %s975_s17, 4  ;;  %s892_s22 = int_to_ptr.vmem [resolvable:$false] %s891_s22 }
  0x41   : > { %s893_s23 = scalar_lea.vmem %s892_s22, 256  ;;  %p894_p13 = scmp.lt.s32.totalorder %s168_s27, %s892_s22 }
  0x42   : > { %p889_p9 = pnand %p887_p7, %p875_p0  ;;  %p895_p5 = scmp.lt.s32.totalorder %s893_s23, %s886_s21 }
  0x44   : > { %p890_p3 = pneg %p889_p9  ;;  %p896_p4 = por %p895_p5, %p894_p13 }
  0x46   : > { %p897_p8 = pnand %p896_p4, %p890_p3 }
  0x48   : > { %900 = shalt.err (!%p897_p8)
}
  0x49   : > { %773 = dma.hbm_to_vmem [thread:$0]  (!%p1095_p11), %s1093_s25, 128, %s168_s27, %s157_s29  }
  0x4a   : > { %p1204_p10 = scmp.ne.s32.totalorder %s1199_s20, 0 }
  0x4b   : > { %s1116_s24 = sand.u32 (!%p1204_p10), 1, %s961_s13   ;;  %p1205_p0 = scmp.ne.s32.totalorder (!%p1204_p10), %s1197_s18, 0 }
  0x4c   : > { %176 = sbr.rel (%p1204_p10) target bundleno = 319 (0x13f), region = 32  ;;  %s729_s26 = sshll.u32 (!%p1204_p10), %s1116_s24, 3 }
  0x4d   : > { %s179_s30 = scalar_lea.sflag (!%p1204_p10), [#allocation3], %s1116_s24  ;;  %s1120_s4 = scalar_lea.vmem (!%p1204_p10), [#allocation2], %s729_s26 }
  0x51   : > { %944 = dma.done.wait (%p1205_p0), %s179_s30, 128  }
  0x52   : > { %946 = vsyncadd (%p1205_p0), %s179_s30, 4294967168  ;;  %p1206_p4 = scmp.eq.s32.totalorder %s1019_s16, 0 }
  0x54   : > { %948 = dma.done.wait (%p1206_p4), [#allocation6], 5248   ;;  %p1207_p8 = pmov %p1206_p4 }
  0x55   : > { %v976_v0 = vmov 0.0   ;;  %vm300_vm0 = vcmask 1043456   ;;  %v247_v1 = vld [vmem:[#allocation5 + $0x108] sm:$0xf]  ;;  %v249_v2 = vld [vmem:[#allocation5 + $0x118] sm:$0xf]  ;;  %v256_v42 = vlaneseq }
  0x56   : > { %950 = vsyncadd (%p1207_p8), [#allocation6], 4294962048  ;;  %389 = vmatprep.mubr.f32.mxu0 %v976_v0  ;;  %460 = vmatprep.mubr.f32.mxu1 %v976_v0  ;;  %v246_v3 = vld [vmem:[#allocation5 + $0x100] sm:$0xf]  ;;  %v248_v4 = vld [vmem:[#allocation5 + $0x110] sm:$0xf] }
  0x57   : > { %733 = vmatprep.subr.msk.mxu0 %vm300_vm0, %v247_v1  ;;  %736 = vmatprep.subr.msk.mxu1 %vm300_vm0, %v249_v2  ;;  %v239_v5 = vld [vmem:[#allocation5 + $0xc8] sm:$0xff]  ;;  %v241_v6 = vld [vmem:[#allocation5 + $0xd8] sm:$0xff]  ;;  %v238_v7 = vld [vmem:[#allocation5 + $0xc0] sm:$0xff]  ;;  %vm296_vm1 = vcmask 293888   ;;  %v257_v43 = vshrl.u32 %v256_v42, 7  ;;  %s732_s18 = sshll.u32 %s1116_s24, 6 }
  0x58   : > { %734 = vmatpush1.msk.msra.mxu0 %vm300_vm0, %v246_v3  ;;  %737 = vmatpush1.msk.msra.mxu1 %vm300_vm0, %v248_v4  ;;  %v240_v8 = vld [vmem:[#allocation5 + $0xd0] sm:$0xff]  ;;  %v231_v9 = vld [vmem:[#allocation5 + $0x88] sm:$0xff]  ;;  %v233_v10 = vld [vmem:[#allocation5 + $0x98] sm:$0xff]  ;;  %s212_s20 = scalar_lea.vmem [#allocation8], %s732_s18  ;;  %s750_s25 = sshll.u32 %s1019_s16, 10 }
  0x59   : > { %349 = vmatprep.subr.mxu0 %v239_v5  ;;  %420 = vmatprep.subr.mxu1 %v241_v6  ;;  %v230_v11 = vld [vmem:[#allocation5 + $0x80] sm:$0xff]  ;;  %v232_v12 = vld [vmem:[#allocation5 + $0x90] sm:$0xff]  ;;  %v223_v13 = vld [vmem:[#allocation5 + $0x48] sm:$0xff]  ;;  %v258_v44 = vsub.s32 0, %v257_v43  ;;  %v266_v45 = vsub.s32 2, %v257_v43  ;;  %v262_v47 = vsub.s32 1, %v257_v43  ;;  %s1152_s5 = scalar_lea.hbm %s1192_s3, %s750_s25 }
  0x5a   : > { %350 = vmatpush1.msra.mxu0 %v238_v7  ;;  %421 = vmatpush1.msra.mxu1 %v240_v8  ;;  %v225_v14 = vld [vmem:[#allocation5 + $0x58] sm:$0xff]  ;;  %v222_v15 = vld [vmem:[#allocation5 + $0x40] sm:$0xff]  ;;  %v224_v16 = vld [vmem:[#allocation5 + $0x50] sm:$0xff]  ;;  %v270_v48 = vsub.s32 3, %v257_v43  ;;  %v274_v61 = vsub.s32 4, %v257_v43  ;;  %v282_v62 = vsub.s32 6, %v257_v43 }
  0x5b   : > { %351 = vmatprep.subr.mxu0 %v231_v9  ;;  %422 = vmatprep.subr.mxu1 %v233_v10  ;;  %v215_v17 = vld [vmem:[#allocation5 + $0x8] sm:$0xff]  ;;  %v217_v18 = vld [vmem:[#allocation5 + $0x18] sm:$0xff]  ;;  %v214_v19 = vld [vmem:[#allocation5] sm:$0xff]  ;;  %v278_v63 = vsub.s32 5, %v257_v43  ;;  %s632_s27 = sshll.u32 %s212_s20, 4  ;;  %s618_s6 = scalar_lea.sflag [#allocation4], %s1116_s24  ;;  %s633_s27 = int_to_ptr.vmem [resolvable:$true] %s632_s27 }
  0x5c   : > { %352 = vmatpush1.msra.mxu0 %v230_v11  ;;  %423 = vmatpush1.msra.mxu1 %v232_v12  ;;  %v216_v20 = vld [vmem:[#allocation5 + $0x10] sm:$0xff]  ;;  %v251_v22 = vld [vmem:[#allocation5 + $0x128] sm:$0xf]  ;;  %v253_v23 = vld [vmem:[#allocation5 + $0x138] sm:$0xf]  ;;  %s901_s16 = scalar_lea.vmem %s633_s27, 1024 }
  0x5d   : > { %353 = vmatprep.subr.mxu0 %v223_v13  ;;  %424 = vmatprep.subr.mxu1 %v225_v14  ;;  %v213_v21 = vld [vmem:[%s1120_s4] sm:$0xff]  ;;  %v250_v24 = vld [vmem:[#allocation5 + $0x120] sm:$0xf]  ;;  %v243_v26 = vld [vmem:[#allocation5 + $0xe8] sm:$0xff]  ;;  %p902_p3 = scmp.ne.s32.totalorder %s633_s27, %s901_s16  ;;  %p1208_p11 = scmp.ne.s32.totalorder %s1202_s10, 0 }
  0x5e   : > { %354 = vmatpush1.msra.mxu0 %v222_v15  ;;  %425 = vmatpush1.msra.mxu1 %v224_v16  ;;  %v252_v25 = vld [vmem:[#allocation5 + $0x130] sm:$0xf]  ;;  %v245_v27 = vld [vmem:[#allocation5 + $0xf8] sm:$0xff]  ;;  %v242_v28 = vld [vmem:[#allocation5 + $0xe0] sm:$0xff]  ;;  %s977_s8 = smov [#allocation8]  }
  0x5f   : > { %355 = vmatprep.subr.mxu0 %v215_v17  ;;  %426 = vmatprep.subr.mxu1 %v217_v18  ;;  %v244_v29 = vld [vmem:[#allocation5 + $0xf0] sm:$0xff]  ;;  %v235_v30 = vld [vmem:[#allocation5 + $0xa8] sm:$0xff]  ;;  %v237_v31 = vld [vmem:[#allocation5 + $0xb8] sm:$0xff]  ;;  %p903_p1 = pnand %p902_p3, %p1208_p11  ;;  %s905_s9 = sshll.u32 %s977_s8, 4  ;;  %s906_s9 = int_to_ptr.vmem [resolvable:$false] %s905_s9 }
  0x60   : > { %356 = vmatpush1.msra.mxu0 %v214_v19  ;;  %427 = vmatpush1.msra.mxu1 %v216_v20  ;;  %v234_v32 = vld [vmem:[#allocation5 + $0xa0] sm:$0xff]  ;;  %v236_v33 = vld [vmem:[#allocation5 + $0xb0] sm:$0xff]  ;;  %v227_v34 = vld [vmem:[#allocation5 + $0x68] sm:$0xff]  ;;  %s907_s21 = scalar_lea.vmem %s906_s9, 2048  ;;  %p908_p6 = scmp.lt.s32.totalorder %s633_s27, %s906_s9 }
  0x61   : > { %735 = vmatmul.mubr.msk.f32.vlgmr.msra.gmra.mxu0 %vm296_vm1, %v213_v21  ;;  %738 = vmatmul.mubr.msk.f32.vlgmr.msra.gmra.mxu1 %vm296_vm1, %v213_v21  ;;  %v229_v35 = vld [vmem:[#allocation5 + $0x78] sm:$0xff]  ;;  %v226_v36 = vld [vmem:[#allocation5 + $0x60] sm:$0xff]  ;;  %v228_v37 = vld [vmem:[#allocation5 + $0x70] sm:$0xff]  ;;  %p904_p2 = pneg %p903_p1  ;;  %p909_p12 = scmp.lt.s32.totalorder %s907_s21, %s901_s16 }
  0x62   : > { %739 = vmatprep.subr.msk.mxu0 %vm300_vm0, %v251_v22  ;;  %742 = vmatprep.subr.msk.mxu1 %vm300_vm0, %v253_v23  ;;  %v219_v38 = vld [vmem:[#allocation5 + $0x28] sm:$0xff]  ;;  %v221_v39 = vld [vmem:[#allocation5 + $0x38] sm:$0xff]  ;;  %v218_v40 = vld [vmem:[#allocation5 + $0x20] sm:$0xff] }
  0x63   : > { %740 = vmatpush1.msk.msra.mxu0 %vm300_vm0, %v250_v24  ;;  %743 = vmatpush1.msk.msra.mxu1 %vm300_vm0, %v252_v25  ;;  %v220_v41 = vld [vmem:[#allocation5 + $0x30] sm:$0xff]  ;;  %v254_v46 = vld [vmem:[#allocation7] sm:$0xff]  ;;  %p910_p7 = por %p909_p12, %p908_p6 }
  0x64   : > { %491 = vmatprep.subr.mxu0 %v243_v26  ;;  %562 = vmatprep.subr.mxu1 %v245_v27  ;;  %v259_v49 = vrot.slane %v254_v46, %v258_v44  ;;  %v267_v50 = vrot.slane %v254_v46, %v266_v45  ;;  %v263_v51 = vrot.slane %v254_v46, %v262_v47 }
  0x65   : > { %492 = vmatpush1.msra.mxu0 %v242_v28  ;;  %563 = vmatpush1.msra.mxu1 %v244_v29  ;;  %v271_v52 = vrot.slane %v254_v46, %v270_v48  ;;  %v275_v1 = vrot.slane %v254_v46, %v274_v61  ;;  %v283_v2 = vrot.slane %v254_v46, %v282_v62  ;;  %p911_p9 = pnand %p910_p7, %p904_p2 }
  0x66   : > { %493 = vmatprep.subr.mxu0 %v235_v30  ;;  %564 = vmatprep.subr.mxu1 %v237_v31  ;;  %v279_v3 = vrot.slane %v254_v46, %v278_v63 }
  0x67   : > { %494 = vmatpush1.msra.mxu0 %v234_v32  ;;  %565 = vmatpush1.msra.mxu1 %v236_v33 }
  0x68   : > { %495 = vmatprep.subr.mxu0 %v227_v34  ;;  %566 = vmatprep.subr.mxu1 %v229_v35 }
  0x69   : > { %496 = vmatpush1.msra.mxu0 %v226_v36  ;;  %567 = vmatpush1.msra.mxu1 %v228_v37 }
  0x6a   : > { %497 = vmatprep.subr.mxu0 %v219_v38  ;;  %568 = vmatprep.subr.mxu1 %v221_v39 }
  0x6b   : > { %498 = vmatpush1.msra.mxu0 %v218_v40  ;;  %531 = vmatprep.mubr.f32.mxu0 %v976_v0 }
  0x6c   : > { %569 = vmatpush1.msra.mxu1 %v220_v41  ;;  %602 = vmatprep.mubr.f32.mxu1 %v976_v0  ;;  %v286_v0 = vsub.s32 7, %v257_v43 }
  0x6d   : > { %741 = vmatmul.mubr.msk.f32.vlgmr.msra.gmra.mxu0 %vm296_vm1, %v213_v21  ;;  %744 = vmatmul.mubr.msk.f32.vlgmr.msra.gmra.mxu1 %vm296_vm1, %v213_v21 }
  0x6e   : > { %v287_v4 = vrot.slane %v254_v46, %v286_v0 }
 0x121   : > { %v391_v53 = vpop.f32.mrf.mxu0  ;;  %v462_v54 = vpop.f32.mrf.mxu1 }
 0x122   : > { %v392_v55 = vadd.f32 %v391_v53, %v259_v49  ;;  %v463_v56 = vadd.f32 %v462_v54, %v267_v50 }
 0x123   : > { %v393_v57 = vpop.f32.mrf.mxu0  ;;  %v464_v58 = vpop.f32.mrf.mxu1 }
 0x124   : > { %609 = vst [vmem:[%s212_s20] sm:$0xff] %v392_v55  ;;  %611 = vst [vmem:[%s212_s20 + $0x10] sm:$0xff] %v463_v56  ;;  %v394_v59 = vadd.f32 %v393_v57, %v263_v51  ;;  %v465_v60 = vadd.f32 %v464_v58, %v271_v52 }
 0x126   : > { %610 = vst [vmem:[%s212_s20 + $0x8] sm:$0xff] %v394_v59  ;;  %612 = vst [vmem:[%s212_s20 + $0x18] sm:$0xff] %v465_v60 }
 0x12d   : > { %v533_v5 = vpop.f32.mrf.mxu0  ;;  %v604_v6 = vpop.f32.mrf.mxu1 }
 0x12e   : > { %v534_v7 = vadd.f32 %v533_v5, %v275_v1  ;;  %v605_v8 = vadd.f32 %v604_v6, %v283_v2 }
 0x12f   : > { %v535_v9 = vpop.f32.mrf.mxu0  ;;  %v606_v10 = vpop.f32.mrf.mxu1 }
 0x130   : > { %613 = vst [vmem:[%s212_s20 + $0x20] sm:$0xff] %v534_v7  ;;  %615 = vst [vmem:[%s212_s20 + $0x30] sm:$0xff] %v605_v8  ;;  %v536_v11 = vadd.f32 %v535_v9, %v279_v3  ;;  %v607_v12 = vadd.f32 %v606_v10, %v287_v4 }
 0x132   : > { %614 = vst [vmem:[%s212_s20 + $0x28] sm:$0xff] %v536_v11  ;;  %616 = vst [vmem:[%s212_s20 + $0x38] sm:$0xff] %v607_v12 }
 0x133   : > { %914 = shalt.err (!%p911_p9)
}
 0x134   : > { %s915_s17 = scalar_lea.hbm %s1152_s5, 1024  ;;  %s919_s24 = scalar_lea.hbm %s1192_s3, 2048 }
 0x135   : > { %p916_p13 = scmp.ne.s32.totalorder %s1152_s5, %s915_s17  ;;  %p920_p0 = scmp.lt.s32.totalorder %s1152_s5, %s1192_s3 }
 0x136   : > { %p921_p4 = scmp.lt.s32.totalorder %s919_s24, %s915_s17 }
 0x137   : > { %p917_p5 = pnand %p916_p13, %p1208_p11 }
 0x138   : > { %p922_p8 = por %p921_p4, %p920_p0 }
 0x139   : > { %p918_p10 = pneg %p917_p5 }
 0x13b   : > { %p923_p3 = pnand %p922_p8, %p918_p10 }
 0x13d   : > { %926 = shalt.err (!%p923_p3)
}
 0x13e   : > { %761 = dma.vmem_to_hbm [thread:$0]  (%p1208_p11), %s633_s27, 1024, %s1152_s5, %s618_s6  }
 0x13f PF: > { %s644_s4 = sand.u32 1, %s957_s12   ;;  %p1209_p1 = scmp.ne.s32.totalorder %s1198_s19, 0 }
 0x140   : > { %p1210_p2 = scmp.ge.s32.totalorder %s969_s15, 2  ;;  %s645_s18 = scalar_lea.sflag [#allocation4], %s644_s4 }
 0x142   : > { %p775_p6 = pnand %p1210_p2, %p1209_p1 }
 0x144   : > { %p776_p12 = pneg %p775_p6 }
 0x146   : > { %952 = dma.done.wait (%p776_p12), %s645_s18, 1024  }
 0x147   : > { %954 = vsyncadd (%p776_p12), %s645_s18, 4294966272  ;;  %p17_p7 = scmp.ge.s32.totalorder %s1070_s7, 4   ;;  %s1211_s12 = smov %s961_s13 }
 0x148   : > { %s1212_s13 = smov %s965_s14  ;;  %s1213_s14 = smov %s1086_s11 }
 0x149   : > { %s1214_s15 = smov %s1070_s7  ;;  %19 = sbr.rel (!%p17_p7) target bundleno = 6 (0x6), region = 85 }
 0x14e   :  { %650 = vsyncpa [#allocation3], 1 }
 0x14f   :  { %652 = vsyncpa [#allocation3 + $0x1], 1 }
 0x150   :  { %653 = vsyncpa [#allocation6], 1 }
 0x151   :  { %654 = vsyncpa [#allocation4], 1 }
 0x152   :  { %656 = vsyncpa [#allocation4 + $0x1], 1 }

</bundles_post_ra>
